<compile_context>
chip_gen: v7x
topology: tpu7x:2x2x1
jax: 0.10.0
libtpu: 0.0.40
codegen_flags: <defaults>
</compile_context>

<pallas_src>
import math

import jax
import jax.numpy as jnp
from jax.experimental import pallas as pl
from jax.experimental.pallas import tpu as pltpu


LANE = 128  # TPU lane width


def _round_up(n, m):
    return ((n + m - 1) // m) * m


def _cdiv(a, b):
    return (a + b - 1) // b


def decoder_kernel(z_ref, x_ref, wz_ref, wx_ref, b1_ref, w21_ref, b21_ref, out_ref):
    """One batch tile: sigmoid(softplus([z|x] @ blockdiag(Wz,Wx) + b1) @ W21 + b21)."""
    mxu_dtype = wz_ref.dtype
    # Fused first layer: two MXU dots (block-diagonal weights) into one f32 accumulator.
    h = jnp.dot(z_ref[...].astype(mxu_dtype), wz_ref[...],
                preferred_element_type=jnp.float32)
    h += jnp.dot(x_ref[...].astype(mxu_dtype), wx_ref[...],
                 preferred_element_type=jnp.float32)
    h += b1_ref[...]
    # numerically stable softplus (matches torch.nn.Softplus within f32 eps)
    h = jnp.maximum(h, 0.0) + jnp.log1p(jnp.exp(-jnp.abs(h)))

    # fc21 over the (implicitly concatenated, jointly lane-padded) hidden
    logits = jnp.dot(h.astype(w21_ref.dtype), w21_ref[...],
                     preferred_element_type=jnp.float32)
    logits += b21_ref[...]
    # sigmoid via a single EUP tanh: sigmoid(x) = 0.5 * tanh(0.5 x) + 0.5
    out_ref[...] = (0.5 * jnp.tanh(0.5 * logits) + 0.5).astype(out_ref.dtype)


def pack_decoder_params(wz, bz, wx, bx, w21, b21, mxu_dtype=jnp.bfloat16):
    """Pack per-layer weights ([in, out] layout) into the fused/padded layout.

    wz: [z_dim, H]   bz: [H]
    wx: [x_dim, H]   bx: [H]
    w21:[2H, y_dim]  b21:[y_dim]   (first H rows multiply hz, last H multiply hx)
    """
    z_dim, H = wz.shape
    x_dim = wx.shape[0]
    y_dim = w21.shape[1]
    H2 = 2 * H
    H2P = _round_up(H2, LANE)     # joint (not per-half) lane padding of the hidden
    YP = _round_up(y_dim, LANE)   # lane-dense output

    # hz -> hidden columns [0:H], hx -> [H:2H]. Columns [2H:H2P] are padding:
    # softplus(0) = log 2 there, but they hit all-zero rows of w21p, so they
    # contribute exactly nothing to the output (keep this invariant!).
    wz_p = jnp.zeros((z_dim, H2P), mxu_dtype).at[:, :H].set(wz.astype(mxu_dtype))
    wx_p = jnp.zeros((x_dim, H2P), mxu_dtype).at[:, H:H2].set(wx.astype(mxu_dtype))

    b1 = jnp.zeros((1, H2P), jnp.float32)
    b1 = b1.at[0, :H].set(bz.astype(jnp.float32))
    b1 = b1.at[0, H:H2].set(bx.astype(jnp.float32))

    # fc21: rows [0:2H] map 1:1 onto the packed hidden columns; padded rows and
    # padded output columns are zero. Biases stay f32 (added post-accumulation).
    w21p = jnp.zeros((H2P, YP), mxu_dtype).at[:H2, :y_dim].set(w21.astype(mxu_dtype))
    b21p = jnp.zeros((1, YP), jnp.float32).at[0, :y_dim].set(b21.astype(jnp.float32))

    return {"wz": wz_p, "wx": wx_p, "b1": b1, "w21": w21p, "b21": b21p, "y_dim": y_dim}


def decoder_forward(z, x, params, *, max_batch_tile=512):
    """z: [B, z_dim], x: [B, x_dim] -> [B, y_dim] (float32)."""
    B, z_dim = z.shape
    x_dim = x.shape[1]
    wz, wx, b1, w21, b21 = (params["wz"], params["wx"], params["b1"],
                            params["w21"], params["b21"])
    y_dim = params["y_dim"]
    H2P = wz.shape[1]
    YP = w21.shape[1]

    # Tile choice: an even number of tiles >= 2 so v7x's two TensorCores both
    # get work under the "parallel" semantics, sized to minimize dead-row
    # padding. max_batch_tile is worth a one-off sweep over {256, 512, 1024}.
    num_tiles = max(2, _cdiv(B, max_batch_tile))
    num_tiles += num_tiles % 2                       # even -> balanced on 2 cores
    TB = _round_up(_cdiv(B, num_tiles), 8)           # sublane-aligned batch tile
    Bp = TB * num_tiles
    if Bp != B:
        z = jnp.pad(z, ((0, Bp - B), (0, 0)))
        x = jnp.pad(x, ((0, Bp - B), (0, 0)))

    resident = lambda a: pl.BlockSpec(a.shape, lambda i: (0,) * a.ndim)

    weight_bytes = sum(int(a.size) * a.dtype.itemsize for a in (wz, wx, b1, w21, b21))
    # VMEM budget: double-buffered batch tiles + (conservatively double-buffered)
    # resident weights + the f32 hidden / bf16-cast / logits intermediates.
    footprint = (2 * TB * (z_dim + x_dim) * 4          # z/x input tiles (f32)
                 + 2 * TB * YP * 4                      # output tiles
                 + 2 * weight_bytes                     # resident weights/biases
                 + TB * H2P * (4 + wz.dtype.itemsize)   # h (f32) + bf16 cast
                 + TB * YP * 4)                         # logits
    vmem_limit = min(max(2 * footprint, 16 * 1024 * 1024), 64 * 1024 * 1024)

    flops = 2 * Bp * (z_dim * H2P + x_dim * H2P + H2P * YP)
    transcendentals = Bp * (2 * H2P + YP)   # exp + log1p per hidden elem, tanh per out elem
    bytes_accessed = 4 * Bp * (z_dim + x_dim + YP) + weight_bytes

    out_padded = pl.pallas_call(
        decoder_kernel,
        out_shape=jax.ShapeDtypeStruct((Bp, YP), jnp.float32),
        grid=(num_tiles,),
        in_specs=[
            pl.BlockSpec((TB, z_dim), lambda i: (i, 0)),   # batch-tiled z
            pl.BlockSpec((TB, x_dim), lambda i: (i, 0)),   # batch-tiled x
            resident(wz),                                  # weights stay VMEM-resident
            resident(wx),
            resident(b1),
            resident(w21),
            resident(b21),
        ],
        out_specs=pl.BlockSpec((TB, YP), lambda i: (i, 0)),
        compiler_params=pltpu.CompilerParams(
            dimension_semantics=("parallel",),
            vmem_limit_bytes=vmem_limit,
        ),
        cost_estimate=pl.CostEstimate(
            flops=flops,
            transcendentals=transcendentals,
            bytes_accessed=bytes_accessed,
        ),
    )(z, x, wz, wx, b1, w21, b21)

    return out_padded[:B, :y_dim]


def xavier_uniform(key, fan_in, fan_out):
    # matches torch.nn.init.xavier_uniform_ (gain=1): U(-a, a), a = sqrt(6/(fan_in+fan_out));
    # returned already transposed to [in, out] layout.
    a = math.sqrt(6.0 / (fan_in + fan_out))
    return jax.random.uniform(key, (fan_in, fan_out), jnp.float32, minval=-a, maxval=a)


if __name__ == "__main__":
    # small shapes consistent with the module
    batch, z_dim, hidden_dim, y_dim, x_dim = 2, 4, 32, 16, 8

    key = jax.random.PRNGKey(0)
    kwz, kwx, kw21, kz_in, kx_in = jax.random.split(key, 5)

    # "PyTorch-layout" parameters (Xavier-uniform weights, zero biases), then pack.
    wz = xavier_uniform(kwz, z_dim, hidden_dim)            # fcz.weight^T
    wx = xavier_uniform(kwx, x_dim, hidden_dim)            # fcx.weight^T
    w21 = xavier_uniform(kw21, 2 * hidden_dim, y_dim)      # fc21.weight^T
    bz = jnp.zeros((hidden_dim,), jnp.float32)
    bx = jnp.zeros((hidden_dim,), jnp.float32)
    b21 = jnp.zeros((y_dim,), jnp.float32)

    params = pack_decoder_params(wz, bz, wx, bx, w21, b21)  # bf16 MXU weights by default

    z = jax.random.normal(kz_in, (batch, z_dim), jnp.float32)
    x = jax.random.normal(kx_in, (batch, x_dim), jnp.float32)

    out = decoder_forward(z, x, params)
    jax.block_until_ready(out)

    # pure-JAX f32 reference on the original (unpadded, unfused) parameters
    hz = jax.nn.softplus(z @ wz + bz)
    hx = jax.nn.softplus(x @ wx + bx)
    hidden = jnp.concatenate([hz, hx], axis=1)
    ref = jax.nn.sigmoid(hidden @ w21 + b21)

    assert out.shape == (batch, y_dim)
    # bf16 MXU inputs (f32 accumulation / activation math) => ~1e-2-level error;
    # outputs live in (0,1) so an absolute tolerance is the right check.
    err = float(jnp.max(jnp.abs(out - ref)))
    assert err < 3e-2, err

    print("KERNEL_OK")
</pallas_src>

<mosaic_0001>
module attributes {stable_mosaic.version = 11 : i64} {
  func.func @decoder_kernel(%arg0: i32, %arg1: memref<8x4xf32, #tpu.memory_space<vmem>>, %arg2: memref<8x8xf32, #tpu.memory_space<vmem>>, %arg3: memref<4x128xbf16, #tpu.memory_space<vmem>>, %arg4: memref<8x128xbf16, #tpu.memory_space<vmem>>, %arg5: memref<1x128xf32, #tpu.memory_space<vmem>>, %arg6: memref<128x128xbf16, #tpu.memory_space<vmem>>, %arg7: memref<1x128xf32, #tpu.memory_space<vmem>>, %arg8: memref<8x128xf32, #tpu.memory_space<vmem>>) attributes {dimension_semantics = [#tpu.dimension_semantics<parallel>], iteration_bounds = array<i64: 2>, scalar_prefetch = 0 : i64, scratch_operands = 0 : i64, tpu.core_type = #tpu.core_type<tc>, window_params = [{transform_indices = @transform_0, window_bounds = array<i64: 8, 4>}, {transform_indices = @transform_1, window_bounds = array<i64: 8, 8>}, {pipeline_mode = #tpu.pipeline_mode<synchronous>, transform_indices = @transform_2, window_bounds = array<i64: 4, 128>}, {pipeline_mode = #tpu.pipeline_mode<synchronous>, transform_indices = @transform_3, window_bounds = array<i64: 8, 128>}, {pipeline_mode = #tpu.pipeline_mode<synchronous>, transform_indices = @transform_4, window_bounds = array<i64: 1, 128>}, {pipeline_mode = #tpu.pipeline_mode<synchronous>, transform_indices = @transform_5, window_bounds = array<i64: 128, 128>}, {pipeline_mode = #tpu.pipeline_mode<synchronous>, transform_indices = @transform_6, window_bounds = array<i64: 1, 128>}, {transform_indices = @transform_7, window_bounds = array<i64: 8, 128>}]} {
    %c0 = arith.constant 0 : index
    %c0_0 = arith.constant 0 : index
    %0 = vector.load %arg1[%c0, %c0_0] : memref<8x4xf32, #tpu.memory_space<vmem>>, vector<8x4xf32>
    %1 = arith.truncf %0 : vector<8x4xf32> to vector<8x4xbf16>
    %c0_1 = arith.constant 0 : index
    %c0_2 = arith.constant 0 : index
    %2 = vector.load %arg3[%c0_1, %c0_2] : memref<4x128xbf16, #tpu.memory_space<vmem>>, vector<4x128xbf16>
    %cst = arith.constant dense<0.000000e+00> : vector<8x128xf32>
    %3 = tpu.matmul %1, %2, %cst {dimension_numbers = #tpu.dot_dimension_numbers<[1], [0], [0], [1], [0, 0, 1, 1], [], []>} : vector<8x4xbf16>, vector<4x128xbf16>, vector<8x128xf32> -> vector<8x128xf32>
    %c0_3 = arith.constant 0 : index
    %c0_4 = arith.constant 0 : index
    %4 = vector.load %arg2[%c0_3, %c0_4] : memref<8x8xf32, #tpu.memory_space<vmem>>, vector<8x8xf32>
    %5 = arith.truncf %4 : vector<8x8xf32> to vector<8x8xbf16>
    %c0_5 = arith.constant 0 : index
    %c0_6 = arith.constant 0 : index
    %6 = vector.load %arg4[%c0_5, %c0_6] : memref<8x128xbf16, #tpu.memory_space<vmem>>, vector<8x128xbf16>
    %cst_7 = arith.constant dense<0.000000e+00> : vector<8x128xf32>
    %7 = tpu.matmul %5, %6, %cst_7 {dimension_numbers = #tpu.dot_dimension_numbers<[1], [0], [0], [1], [0, 0, 1, 1], [], []>} : vector<8x8xbf16>, vector<8x128xbf16>, vector<8x128xf32> -> vector<8x128xf32>
    %8 = arith.addf %3, %7 : vector<8x128xf32>
    %c0_8 = arith.constant 0 : index
    %c0_9 = arith.constant 0 : index
    %9 = vector.load %arg5[%c0_8, %c0_9] : memref<1x128xf32, #tpu.memory_space<vmem>>, vector<1x128xf32>
    %10 = vector.broadcast %9 : vector<1x128xf32> to vector<8x128xf32>
    %11 = arith.addf %8, %10 : vector<8x128xf32>
    %cst_10 = arith.constant 0.000000e+00 : f32
    %12 = vector.broadcast %cst_10 : f32 to vector<8x128xf32>
    %13 = arith.maximumf %11, %12 : vector<8x128xf32>
    %14 = math.absf %11 : vector<8x128xf32>
    %cst_11 = arith.constant 0.000000e+00 : f32
    %15 = vector.broadcast %cst_11 : f32 to vector<8x128xf32>
    %16 = arith.subf %15, %14 : vector<8x128xf32>
    %17 = math.exp %16 : vector<8x128xf32>
    %18 = math.log1p %17 : vector<8x128xf32>
    %19 = arith.addf %13, %18 : vector<8x128xf32>
    %20 = arith.truncf %19 : vector<8x128xf32> to vector<8x128xbf16>
    %c0_12 = arith.constant 0 : index
    %c0_13 = arith.constant 0 : index
    %21 = vector.load %arg6[%c0_12, %c0_13] : memref<128x128xbf16, #tpu.memory_space<vmem>>, vector<128x128xbf16>
    %cst_14 = arith.constant dense<0.000000e+00> : vector<8x128xf32>
    %22 = tpu.matmul %20, %21, %cst_14 {dimension_numbers = #tpu.dot_dimension_numbers<[1], [0], [0], [1], [0, 0, 1, 1], [], []>} : vector<8x128xbf16>, vector<128x128xbf16>, vector<8x128xf32> -> vector<8x128xf32>
    %c0_15 = arith.constant 0 : index
    %c0_16 = arith.constant 0 : index
    %23 = vector.load %arg7[%c0_15, %c0_16] : memref<1x128xf32, #tpu.memory_space<vmem>>, vector<1x128xf32>
    %24 = vector.broadcast %23 : vector<1x128xf32> to vector<8x128xf32>
    %25 = arith.addf %22, %24 : vector<8x128xf32>
    %cst_17 = arith.constant 5.000000e-01 : f32
    %26 = vector.broadcast %cst_17 : f32 to vector<8x128xf32>
    %27 = arith.mulf %26, %25 : vector<8x128xf32>
    %28 = math.tanh %27 : vector<8x128xf32>
    %cst_18 = arith.constant 5.000000e-01 : f32
    %29 = vector.broadcast %cst_18 : f32 to vector<8x128xf32>
    %30 = arith.mulf %29, %28 : vector<8x128xf32>
    %cst_19 = arith.constant 5.000000e-01 : f32
    %31 = vector.broadcast %cst_19 : f32 to vector<8x128xf32>
    %32 = arith.addf %30, %31 : vector<8x128xf32>
    %c0_20 = arith.constant 0 : index
    %c0_21 = arith.constant 0 : index
    %33 = vector.load %arg8[%c0_20, %c0_21] : memref<8x128xf32, #tpu.memory_space<vmem>>, vector<8x128xf32>
    tpu.vector_store %arg8[%c0_20, %c0_21], %32 {strides = array<i32>} : memref<8x128xf32, #tpu.memory_space<vmem>>, vector<8x128xf32>,
    return
  }
  func.func @transform_0(%arg0: i32) -> (i32, i32) {
    %c0_i32 = arith.constant 0 : i32
    %c0_i32_0 = arith.constant 0 : i32
    return %arg0, %c0_i32 : i32, i32
  }
  func.func @transform_1(%arg0: i32) -> (i32, i32) {
    %c0_i32 = arith.constant 0 : i32
    %c0_i32_0 = arith.constant 0 : i32
    return %arg0, %c0_i32 : i32, i32
  }
  func.func @transform_2(%arg0: i32) -> (i32, i32) {
    %c0_i32 = arith.constant 0 : i32
    %c0_i32_0 = arith.constant 0 : i32
    %c0_i32_1 = arith.constant 0 : i32
    return %c0_i32, %c0_i32_0 : i32, i32
  }
  func.func @transform_3(%arg0: i32) -> (i32, i32) {
    %c0_i32 = arith.constant 0 : i32
    %c0_i32_0 = arith.constant 0 : i32
    %c0_i32_1 = arith.constant 0 : i32
    return %c0_i32, %c0_i32_0 : i32, i32
  }
  func.func @transform_4(%arg0: i32) -> (i32, i32) {
    %c0_i32 = arith.constant 0 : i32
    %c0_i32_0 = arith.constant 0 : i32
    %c0_i32_1 = arith.constant 0 : i32
    return %c0_i32, %c0_i32_0 : i32, i32
  }
  func.func @transform_5(%arg0: i32) -> (i32, i32) {
    %c0_i32 = arith.constant 0 : i32
    %c0_i32_0 = arith.constant 0 : i32
    %c0_i32_1 = arith.constant 0 : i32
    return %c0_i32, %c0_i32_0 : i32, i32
  }
  func.func @transform_6(%arg0: i32) -> (i32, i32) {
    %c0_i32 = arith.constant 0 : i32
    %c0_i32_0 = arith.constant 0 : i32
    %c0_i32_1 = arith.constant 0 : i32
    return %c0_i32, %c0_i32_0 : i32, i32
  }
  func.func @transform_7(%arg0: i32) -> (i32, i32) {
    %c0_i32 = arith.constant 0 : i32
    %c0_i32_0 = arith.constant 0 : i32
    return %arg0, %c0_i32 : i32, i32
  }
}

</mosaic_0001>

<bundles_post_ra>
// kernel: tpu_custom_call.1
= control target key start
LH: loop header
LB: loop body
LE: loop exit
PB: predicated region body
PF: predicated region fallthrough
CT: control target
= control target key end

     0   :  { %12 = vsyncpa [#allocation3], 0  ;;  %s1079_s0 = inlined_call_operand.vmem [shape: f32[16,4], index: 0, kind: input, shape index: {}]   ;;  %s1080_s1 = inlined_call_operand.vmem [shape: f32[16,8], index: 1, kind: input, shape index: {}]   ;;  %s1081_s2 = inlined_call_operand.vmem [shape: bf16[4,128], index: 2, kind: input, shape index: {}]   ;;  %s1082_s3 = inlined_call_operand.vmem [shape: bf16[8,128], index: 3, kind: input, shape index: {}]   ;;  %s1083_s4 = inlined_call_operand.vmem [shape: f32[1,128], index: 4, kind: input, shape index: {}]   ;;  %s1084_s5 = inlined_call_operand.hbm [shape: bf16[128,128], index: 5, kind: input, shape index: {}]   ;;  %s1085_s6 = inlined_call_operand.vmem [shape: f32[1,128], index: 6, kind: input, shape index: {}]   ;;  %s1086_s7 = inlined_call_operand.hbm [shape: f32[16,128], index: 7, kind: output, shape index: {}]  }
   0x1   :  { %13 = vsyncpa [#allocation4], 0 }
   0x2   :  { %15 = vsyncpa [#allocation4 + $0x1], 0  ;;  %s926_s24 = smov 0   ;;  %s928_s25 = smov 0  }
   0x3   :  { %s930_s26 = smov 0   ;;  %s932_s27 = smov 0  }
   0x4 LB: > { %s947_s28 = sadd.s32 4294967295, %s878_s27   ;;  %s646_s29 = sadd.s32 4294967294, %s878_s27   ;;  %s878_s27 = sphi %s932_s27, %s1102_s27   ;;  %s874_s26 = sphi %s930_s26, %s1101_s26   ;;  %s870_s25 = sphi %s928_s25, %s1100_s25   ;;  %s866_s24 = sphi %s926_s24, %s1099_s24  }
   0x5   : > { %s951_s30 = sadd.s32 1, %s878_s27   ;;  %s185_s8 = sadd.s32 1, %s874_s26 }
   0x6   : > { %s182_s9 = ssub.s32 %s878_s27, %s951_s30  ;;  %p195_p0 = scmp.ne.s32.totalorder %s874_s26, %s870_s25 }
   0x7   : > { %p183_p1 = scmp.eq.s32.totalorder %s182_s9, 0  ;;  %p196_p2 = scmp.eq.s32.totalorder %s947_s28, 1 }
   0x8   : > { %p201_p3 = scmp.ne.s32.totalorder %s870_s25, %s866_s24  ;;  %p202_p4 = scmp.eq.s32.totalorder %s646_s29, 1 }
   0x9   : > { %s962_s10 = scalar_select %p183_p1, %s874_s26, %s185_s8  }
   0xa   : > { %p964_p5 = por %p196_p2, %p195_p0  ;;  %p968_p6 = por %p202_p4, %p201_p3 }
   0xb   : > { %p647_p7 = scmp.ge.s32.totalorder %s878_s27, 1  ;;  %p209_p8 = scmp.lt.s32.totalorder %s878_s27, 3 }
   0xc   : > { %s1090_s11 = scalar_select %p964_p5, 1, 0 }
   0xd   : > { %s1091_s12 = scalar_select %p968_p6, 1, 0 }
   0xe   : > { %p1087_p9 = scmp.eq.s32.totalorder %s947_s28, 0  ;;  %p975_p10 = pnand %p647_p7, %p209_p8 }
   0xf   : > { %s880_s14 = smov [#allocation2]   ;;  %s784_s19 = scalar_lea.hbm %s1084_s5, 1024 }
  0x10   : > { %s1092_s13 = scalar_select %p975_p10, 1, 0 }
  0x11   : > { %s230_s15 = sshll.u32 %s880_s14, 4  ;;  %p722_p11 = pneg %p975_p10  ;;  %s231_s15 = int_to_ptr.vmem [resolvable:$true] %s230_s15 }
  0x12   : > { %p785_p13 = scmp.ne.s32.totalorder %s1084_s5, %s784_s19  ;;  %p791_p3 = scmp.lt.u32.totalorder %s784_s19, %s1084_s5 }
  0x13   : > { %p983_p12 = pnand %p1087_p9, %p722_p11 }
  0x15   : > { %p786_p0 = pneg %p983_p12 }
  0x17   : > { %p787_p1 = pnand %p786_p0, %p785_p13 }
  0x19   : > { %p788_p2 = pneg %p787_p1 }
  0x1b   : > { %p793_p4 = pnand %p791_p3, %p788_p2 }
  0x1d   : > { %796 = shalt.err (!%p793_p4)
}
  0x1e   : > { %s797_s29 = scalar_lea.vmem %s231_s15, 1024  ;;  %p805_p9 = scmp.lt.s32.totalorder %s231_s15, %s231_s15 }
  0x1f   : > { %p798_p7 = scmp.ne.s32.totalorder %s231_s15, %s797_s29  ;;  %p806_p6 = scmp.lt.s32.totalorder %s797_s29, %s797_s29 }
  0x21   : > { %p800_p8 = pnand %p798_p7, %p786_p0  ;;  %p807_p5 = por %p806_p6, %p805_p9 }
  0x23   : > { %p801_p11 = pneg %p800_p8 }
  0x25   : > { %p808_p10 = pnand %p807_p5, %p801_p11 }
  0x27   : > { %811 = shalt.err (!%p808_p10)
}
  0x28   : > { %s881_s8 = smov 64   ;;  %s882_s9 = smov 4  }
  0x29   : > { %725 = dma.hbm_to_vmem [thread:$0]  (!%p983_p12), %s1084_s5, 1024, %s231_s15, [#allocation3], %s881_s8, %s881_s8, %s882_s9  }
  0x2a   : > { %p1094_p13 = scmp.ne.s32.totalorder %s1092_s13, 0 }
  0x2b   : > { %p1095_p1 = scmp.eq.s32.totalorder (!%p1094_p13), %s947_s28, 0 }
  0x2c   : > { %263 = sbr.rel (%p1094_p13) target bundleno = 567 (0x237), region = 48 }
  0x33   : > { %857 = dma.done.wait (%p1095_p1), [#allocation3], 1024   ;;  %p1096_p0 = pmov %p1095_p1 }
  0x34   : > { %p298_p5 = scmp.lt.s32.totalorder %s947_s28, 1  ;;  %v883_v0 = vmov 0.0   ;;  %vm884_vm0 = vmmov 0   ;;  %vm317_vm1 = vcmask 1043456   ;;  %vm365_vm2 = vcmask 1041408   ;;  %v770_v9 = vld [vmem:[#allocation2] sm:$0xff]  }
  0x35   : > { %859 = vsyncadd (%p1096_p0), [#allocation3], 4294966272  ;;  %684 = vmatprep.subr.bf16.mxu1 %v883_v0  ;;  %686 = vmatprep.mubr.msk.bf16.mxu1 %vm884_vm0, %v883_v0  ;;  %v312_v1 = vld [vmem:[%s1082_s3] sm:$0xf]  ;;  %vm313_vm3 = vcmask 64512   ;;  %vm361_vm4 = vcmask 31744  }
  0x36   : > { %s299_s16 = scalar_select %p298_p5, %s947_s28, 1  ;;  %696 = vmatprep.subr.bf16.mxu0 %v883_v0  ;;  %712 = vmatprep.mubr.msk.bf16.mxu0 %vm884_vm0, %v883_v0  ;;  %v319_v3 = vsel %vm317_vm1, %v312_v1, 0  ;;  %v309_v5 = vld [vmem:[%s1081_s2] sm:$0x3]  ;;  %v771_v10 = vld [vmem:[#allocation2 + $0x8] sm:$0xff]   ;;  %v773_v12 = vld [vmem:[#allocation2 + $0x18] sm:$0xff]  }
  0x37   : > { %685 = vmatpush3.bf16.msra.mxu1 %v319_v3  ;;  %v367_v6 = vsel %vm365_vm2, %v309_v5, 0  ;;  %697 = vmatpush3.bf16.msra.mxu0 %v770_v9  ;;  %v772_v11 = vld [vmem:[#allocation2 + $0x10] sm:$0xff]   ;;  %v774_v13 = vld [vmem:[#allocation2 + $0x20] sm:$0xff]   ;;  %v775_v14 = vld [vmem:[#allocation2 + $0x28] sm:$0xff]   ;;  %s295_s15 = sand.u32 1, %s870_s25   ;;  %p1097_p9 = scmp.ne.s32.totalorder %s1090_s11, 0 }
  0x38   : > { %s653_s13 = sshll.u32 %s299_s16, 3  ;;  %690 = vmatprep.subr.bf16.mxu1 %v883_v0  ;;  %698 = vmatprep.subr.bf16.mxu0 %v883_v0  ;;  %v776_v15 = vld [vmem:[#allocation2 + $0x30] sm:$0xff]   ;;  %v777_v16 = vld [vmem:[#allocation2 + $0x38] sm:$0xff]   ;;  %s652_s18 = sshll.u32 %s295_s15, 3 }
  0x39   : > { %s305_s19 = scalar_lea.vmem %s1080_s1, %s653_s13  ;;  %s301_s29 = scalar_lea.vmem %s1079_s0, %s653_s13  ;;  %v657_v22 = vld [vmem:[%s1083_s4] ss:$0 sm:$0xff] }
  0x3a   : > { %v310_v2 = vld [vmem:[%s305_s19] sm:$0xff]  ;;  %s668_s19 = sshll.u32 %s947_s28, 7  ;;  %s297_s20 = scalar_lea.vmem [#allocation5], %s652_s18 }
  0x3b   : > { %v311_v4 = vpack.c.bf16 %v310_v2, %v310_v2  ;;  %v307_v7 = vld [vmem:[%s301_s29] sm:$0xff]  ;;  %699 = vmatpush3.bf16.msra.mxu0 %v771_v10  ;;  %s563_s21 = sshll.u32 %s297_s20, 4  ;;  %s1037_s29 = scalar_lea.hbm %s1086_s7, %s668_s19  ;;  %s1039_s21 = int_to_ptr.vmem [resolvable:$true] %s563_s21 }
  0x3c   : > { %v308_v8 = vpack.c.bf16 %v307_v7, %v307_v7  ;;  %700 = vmatprep.subr.bf16.mxu0 %v883_v0  ;;  %v658_v43 = vld [vmem:[%s1085_s6] ss:$0 sm:$0xff]  ;;  %s550_s8 = scalar_lea.sflag [#allocation4], %s295_s15  ;;  %s812_s9 = scalar_lea.vmem %s1039_s21, 128 }
  0x3d   : > { %687 = vmatmul.mubr.msk.bf16.vlgmr.msra.gmra.mrb[0].mxu1 %vm313_vm3, %v311_v4  ;;  %p813_p6 = scmp.ne.s32.totalorder %s1039_s21, %s812_s9  ;;  %s885_s28 = smov [#allocation5]  }
  0x3e   : > { %691 = vmatpush3.bf16.msra.mxu1 %v367_v6  ;;  %692 = vmatprep.mubr.msk.bf16.mxu1 %vm884_vm0, %v883_v0  ;;  %s816_s14 = sshll.u32 %s885_s28, 4  ;;  %s817_s14 = int_to_ptr.vmem [resolvable:$false] %s816_s14 }
  0x3f   : > { %701 = vmatpush3.bf16.msra.mxu0 %v772_v11  ;;  %p814_p10 = pnand %p813_p6, %p1097_p9  ;;  %s818_s17 = scalar_lea.vmem %s817_s14, 256 }
  0x40   : > { %702 = vmatprep.subr.bf16.mxu0 %v883_v0  ;;  %p819_p2 = scmp.lt.s32.totalorder %s1039_s21, %s817_s14  ;;  %p820_p3 = scmp.lt.s32.totalorder %s818_s17, %s812_s9 }
  0x41   : > { %p815_p12 = pneg %p814_p10 }
  0x42   : > { %p821_p4 = por %p820_p3, %p819_p2 }
  0x43   : > { %703 = vmatpush3.bf16.msra.mxu0 %v773_v12 }
  0x44   : > { %704 = vmatprep.subr.bf16.mxu0 %v883_v0  ;;  %p822_p7 = pnand %p821_p4, %p815_p12 }
  0x45   : > { %693 = vmatmul.mubr.msk.bf16.vlgmr.msra.gmra.mrb[4].mxu1 %vm361_vm4, %v308_v8 }
  0x47   : > { %705 = vmatpush3.bf16.msra.mxu0 %v774_v13 }
  0x48   : > { %706 = vmatprep.subr.bf16.mxu0 %v883_v0 }
  0x4b   : > { %707 = vmatpush3.bf16.msra.mxu0 %v775_v14 }
  0x4c   : > { %708 = vmatprep.subr.bf16.mxu0 %v883_v0 }
  0x4f   : > { %709 = vmatpush3.bf16.msra.mxu0 %v776_v15 }
  0x50   : > { %710 = vmatprep.subr.bf16.mxu0 %v883_v0 }
  0x53   : > { %711 = vmatpush3.bf16.msra.mxu0 %v777_v16 }
 0x110   : > { %v355_v17 = vpop.f32.mrb[0].mxu1 }
 0x111   : > { %v688_v18 = vpop.f32.mrb[1].mxu1 }
 0x112   : > { %v358_v19 = vpop.f32.mrb[2].mxu1 }
 0x113   : > { %v689_v20 = vpop.f32.mrb[3].mxu1 }
 0x118   : > { %v403_v21 = vpop.f32.mrb[4].mxu1 }
 0x119   : > { %v404_v23 = vadd.f32 %v403_v21, %v355_v17  ;;  %v694_v24 = vpop.f32.mrb[5].mxu1 }
 0x11a   : > { %v406_v25 = vpop.f32.mrb[6].mxu1 }
 0x11b   : > { %v416_v26 = vadd.f32 %v657_v22, %v404_v23  ;;  %v695_v27 = vpop.f32.mrb[7].mxu1 }
 0x11d   : > { %v418_v28 = vand.u32 2147483647, %v416_v26  ;;  %v417_v39 = vmax.f32 %v416_v26, 0.0 }
 0x11f   : > { %v419_v29 = vsub.f32 0.0, %v418_v28 }
 0x121   : > { %v420_v30 = vmul.f32 1.442695, %v419_v29 }
 0x123   : > { %778 = vpow2.f32 %v420_v30 }
 0x12d   : > { %v779_v31 = vpop.eup %778 }
 0x12e   : > { %v422_v32 = vadd.f32 1.0, %v779_v31  ;;  %v425_v33 = vmul.f32 -0.5, %v779_v31  ;;  %v428_v35 = vand.u32 2147483647, %v779_v31 }
 0x130   : > { %780 = vlog2.f32 %v422_v32  ;;  %v426_v34 = vadd.f32 1.0, %v425_v33  ;;  %vm429_vm5 = vcmp.lt.f32.partialorder %v428_v35, 0.0004427343 }
 0x132   : > { %v427_v38 = vmul.f32 %v779_v31, %v426_v34 }
 0x13a   : > { %v781_v36 = vpop.eup %780 }
 0x13b   : > { %v424_v37 = vmul.f32 0.6931472, %v781_v36 }
 0x13d   : > { %v430_v40 = vsel %vm429_vm5, %v427_v38, %v424_v37 }
 0x13e   : > { %v431_v41 = vadd.f32 %v430_v40, %v417_v39 }
 0x140   : > { %v432_v42 = vpack.c.bf16 %v431_v41, %v431_v41 }
 0x142   : > { %713 = vmatmul.mubr.bf16.vlgmr.msra.gmra.mrb[0].mxu0 %v432_v42 }
 0x215   : > { %v538_v44 = vpop.f32.mrb[0].mxu0 }
 0x216   : > { %v539_v45 = vadd.f32 %v658_v43, %v538_v44  ;;  %v714_v46 = vpop.f32.mrb[1].mxu0 }
 0x217   : > { %v541_v47 = vpop.f32.mrb[2].mxu0 }
 0x218   : > { %v544_v48 = vmul.f32 0.5, %v539_v45  ;;  %v715_v49 = vpop.f32.mrb[3].mxu0 }
 0x21a   : > { %782 = vtanh.f32 %v544_v48 }
 0x224   : > { %v783_v50 = vpop.eup %782 }
 0x225   : > { %v546_v51 = vmul.f32 0.5, %v783_v50 }
 0x227   : > { %v547_v52 = vadd.f32 0.5, %v546_v51 }
 0x229   : > { %548 = vst [vmem:[%s297_s20] sm:$0xff] %v547_v52 }
 0x22a   : > { %825 = shalt.err (!%p822_p7)
}
 0x22b   : > { %s826_s16 = scalar_lea.hbm %s1037_s29, 128  ;;  %s830_s18 = scalar_lea.hbm %s1086_s7, 256 }
 0x22c   : > { %p827_p8 = scmp.ne.s32.totalorder %s1037_s29, %s826_s16  ;;  %p831_p1 = scmp.lt.u32.totalorder %s1037_s29, %s1086_s7 }
 0x22d   : > { %p832_p0 = scmp.lt.u32.totalorder %s830_s18, %s826_s16  ;;  %p834_p6 = scmp.lt.u32.totalorder %s826_s16, %s1037_s29 }
 0x22e   : > { %p828_p11 = pnand %p827_p8, %p1097_p9 }
 0x22f   : > { %p833_p5 = por %p832_p0, %p831_p1 }
 0x230   : > { %p829_p13 = pneg %p828_p11 }
 0x231   : > { %p835_p10 = por %p834_p6, %p833_p5 }
 0x233   : > { %p836_p12 = pnand %p835_p10, %p829_p13 }
 0x235   : > { %839 = shalt.err (!%p836_p12)
}
 0x236   : > { %720 = dma.vmem_to_hbm [thread:$0]  (%p1097_p9), %s1039_s21, 128, %s1037_s29, %s550_s8  }
 0x237 PF: > { %p732_p2 = scmp.ge.s32.totalorder %s878_s27, 2  ;;  %s575_s22 = sand.u32 1, %s866_s24  }
 0x238   : > { %p1098_p3 = scmp.ne.s32.totalorder %s1091_s12, 0  ;;  %s576_s23 = scalar_lea.sflag [#allocation4], %s575_s22 }
 0x23a   : > { %p727_p4 = pnand %p732_p2, %p1098_p3 }
 0x23c   : > { %861 = dma.done.wait (!%p727_p4), %s576_s23, 128  }
 0x23d   : > { %863 = vsyncadd (!%p727_p4), %s576_s23, 4294967168  ;;  %p18_p7 = scmp.ge.s32.totalorder %s951_s30, 4   ;;  %s1099_s24 = smov %s870_s25 }
 0x23e   : > { %s1100_s25 = smov %s874_s26  ;;  %s1101_s26 = smov %s962_s10 }
 0x23f   : > { %s1102_s27 = smov %s951_s30  ;;  %20 = sbr.rel (!%p18_p7) target bundleno = 4 (0x4), region = 91 }
 0x246   :  { %581 = vsyncpa [#allocation3], 1 }
 0x247   :  { %583 = vsyncpa [#allocation3 + $0x1], 1 }
 0x248   :  { %584 = vsyncpa [#allocation4], 1 }
 0x249   :  { %586 = vsyncpa [#allocation4 + $0x1], 1 }

</bundles_post_ra>
